<compile_context>
chip_gen: v5e
topology: v5e:2x2
jax: 0.10.0
libtpu: 0.0.40
codegen_flags: <defaults>
</compile_context>

<pallas_src>
import jax
import jax.numpy as jnp
from jax import lax
from jax.experimental import pallas as pl
from jax.experimental.pallas import tpu as pltpu


def _make_invdepth_kernel(N, Cin, Cout, H, W, min_depth):
    HW = H * W
    NC = N * Cin
    inv_min_depth = 1.0 / float(min_depth)
    w_is_pow2 = (W & (W - 1)) == 0

    def kernel(x_ref, w_ref, b_ref, o_ref):
        # x_ref: (N*Cin, HW)       f32 VMEM  input (NCHW, spatial flattened)
        # w_ref: (Cout, N*Cin, 9)  f32 VMEM  conv weights pre-broadcast over N
        # b_ref: (Cout,)           f32 SMEM  bias scalars
        # o_ref: (Cout*N, HW)      f32 VMEM  output (co-major rows)
        x = x_ref[...]                       # (NC, HW): full vregs
        w = w_ref[...]                       # (Cout, NC, 9)

        # In-kernel column index (replaces the old col_ids VMEM input).
        pos = lax.broadcasted_iota(jnp.int32, (1, HW), 1)
        if w_is_pow2:
            col = jnp.bitwise_and(pos, W - 1)
        else:
            col = lax.rem(pos, jnp.int32(W))

        # 0/1 f32 boundary masks implementing the zero padding, hoisted once.
        one = jnp.float32(1.0)
        zero = jnp.float32(0.0)
        left_ok = jnp.where(col > 0, one, zero)            # kx = -1 valid
        right_ok = jnp.where(col < (W - 1), one, zero)     # kx = +1 valid
        top_ok = jnp.where(pos >= W, one, zero)            # ky = -1 valid
        bot_ok = jnp.where(pos < (H - 1) * W, one, zero)   # ky = +1 valid
        col_m = {-1: left_ok, 0: None, 1: right_ok}
        row_m = {-1: top_ok, 0: None, 1: bot_ok}

        # Stream the 9 taps: roll (XLU) -> mask (VPU) -> full-width FMA(s).
        accs = [jnp.zeros((NC, HW), jnp.float32) for _ in range(Cout)]
        t = 0
        for ky in (-1, 0, 1):
            for kx in (-1, 0, 1):
                s = ky * W + kx
                tap = x if s == 0 else pltpu.roll(x, (-s) % HW, 1)
                rm, cm = row_m[ky], col_m[kx]
                mask = rm if cm is None else (cm if rm is None else rm * cm)
                if mask is not None:
                    tap = tap * mask                       # zero the padding
                for co in range(Cout):
                    # (NC, 1) per-row weight column * (NC, HW) tap: one wide FMA.
                    accs[co] = accs[co] + w[co, :, t:t + 1] * tap
                t += 1

        # Per-image Cin reduction (contiguous sublane-group sums), bias,
        # sigmoid, 1/min_depth scale; assembled into one lane-dense store.
        outs = []
        for co in range(Cout):
            rows = []
            for n in range(N):
                g = accs[co][n * Cin:(n + 1) * Cin, :]             # (Cin, HW)
                rows.append(jnp.sum(g, axis=0, keepdims=True))     # (1, HW)
            res = jnp.concatenate(rows, axis=0) if N > 1 else rows[0]
            res = jax.nn.sigmoid(res + b_ref[co]) * inv_min_depth
            outs.append(res)
        out = jnp.concatenate(outs, axis=0) if Cout > 1 else outs[0]
        o_ref[...] = out.astype(o_ref.dtype)               # single (Cout*N, HW) vst

    return kernel


def inv_depth_forward(x_nchw, weight_oihw, bias, min_depth=0.5):
    """InvDepth forward. x: (N, Cin, H, W) f32, weight: (Cout, Cin, 3, 3) OIHW."""
    N, Cin, H, W = x_nchw.shape
    Cout, wcin, kh, kw = weight_oihw.shape
    assert (kh, kw) == (3, 3) and wcin == Cin
    HW = H * W

    # Metadata-only reshape of the input; tiny (Cout*N*Cin*9 floats) weight
    # replication over N so the kernel can do full-width FMAs.
    x2d = x_nchw.reshape(N * Cin, HW)
    w9 = weight_oihw.reshape(Cout, Cin, 9)
    w_all = jnp.broadcast_to(w9[:, None, :, :],
                             (Cout, N, Cin, 9)).reshape(Cout, N * Cin, 9)

    kernel = _make_invdepth_kernel(N, Cin, Cout, H, W, min_depth)

    out2d = pl.pallas_call(
        kernel,
        out_shape=jax.ShapeDtypeStruct((Cout * N, HW), jnp.float32),
        in_specs=[
            pl.BlockSpec(memory_space=pltpu.MemorySpace.VMEM),   # x (flattened)
            pl.BlockSpec(memory_space=pltpu.MemorySpace.VMEM),   # weights (pre-broadcast)
            pl.BlockSpec(memory_space=pltpu.MemorySpace.SMEM),   # bias scalars
        ],
        out_specs=pl.BlockSpec(memory_space=pltpu.MemorySpace.VMEM),
    )(x2d, w_all, bias)

    # co-major -> (N, Cout, H, W); metadata-only when Cout == 1 (the default).
    out = out2d.reshape(Cout, N, H, W)
    return jnp.transpose(out, (1, 0, 2, 3))


def _reference(x_nchw, weight_oihw, bias, min_depth):
    """Plain-JAX reference (NCHW / OIHW, zero pad 1) for correctness check."""
    y = lax.conv_general_dilated(
        x_nchw, weight_oihw, window_strides=(1, 1), padding=((1, 1), (1, 1)),
        dimension_numbers=("NCHW", "OIHW", "NCHW"))
    y = y + bias[None, :, None, None]
    return jax.nn.sigmoid(y) / min_depth


if __name__ == "__main__":
    N, Cin, H, W = 2, 4, 16, 16
    Cout = 1
    min_depth = 0.5

    key = jax.random.PRNGKey(0)
    kx_, kw_, kb_ = jax.random.split(key, 3)

    x = jax.random.normal(kx_, (N, Cin, H, W), dtype=jnp.float32)

    # Deterministic parameter init (kaiming-uniform-like bounds), OIHW layout.
    fan_in = Cin * 3 * 3
    bound = 1.0 / (float(fan_in) ** 0.5)
    weight = jax.random.uniform(kw_, (Cout, Cin, 3, 3),
                                minval=-bound, maxval=bound, dtype=jnp.float32)
    bias = jax.random.uniform(kb_, (Cout,), minval=-bound, maxval=bound,
                              dtype=jnp.float32)

    out = inv_depth_forward(x, weight, bias, min_depth)
    out = jax.block_until_ready(out)

    ref = _reference(x, weight, bias, min_depth)
    assert out.shape == (N, Cout, H, W)
    assert jnp.allclose(out, ref, atol=1e-5, rtol=1e-5), "mismatch vs reference"

    print("KERNEL_OK")
</pallas_src>

<mosaic_0001>
module attributes {stable_mosaic.version = 11 : i64} {
  func.func @kernel(%arg0: memref<8x256xf32, #tpu.memory_space<vmem>>, %arg1: memref<1x8x9xf32, #tpu.memory_space<vmem>>, %arg2: memref<1xf32, #tpu.memory_space<smem>>, %arg3: memref<2x256xf32, #tpu.memory_space<vmem>>) attributes {dimension_semantics = [], scalar_prefetch = 0 : i64, scratch_operands = 0 : i64, tpu.core_type = #tpu.core_type<tc>} {
    %c0 = arith.constant 0 : index
    %c0_0 = arith.constant 0 : index
    %0 = vector.load %arg0[%c0, %c0_0] : memref<8x256xf32, #tpu.memory_space<vmem>>, vector<8x256xf32>
    %c0_1 = arith.constant 0 : index
    %c0_2 = arith.constant 0 : index
    %c0_3 = arith.constant 0 : index
    %1 = vector.load %arg1[%c0_1, %c0_2, %c0_3] : memref<1x8x9xf32, #tpu.memory_space<vmem>>, vector<1x8x9xf32>
    %2 = tpu.iota {dimensions = array<i32: 1>} : vector<1x256xi32>
    %c15_i32 = arith.constant 15 : i32
    %3 = vector.broadcast %c15_i32 : i32 to vector<1x256xi32>
    %4 = arith.andi %2, %3 : vector<1x256xi32>
    %c0_i32 = arith.constant 0 : i32
    %5 = vector.broadcast %c0_i32 : i32 to vector<1x256xi32>
    %6 = arith.cmpi sgt, %4, %5 : vector<1x256xi32>
    %cst = arith.constant 1.000000e+00 : f32
    %cst_4 = arith.constant 0.000000e+00 : f32
    %7 = vector.broadcast %cst : f32 to vector<1x256xf32>
    %8 = vector.broadcast %cst_4 : f32 to vector<1x256xf32>
    %9 = arith.select %6, %7, %8 : vector<1x256xi1>, vector<1x256xf32>
    %c15_i32_5 = arith.constant 15 : i32
    %10 = vector.broadcast %c15_i32_5 : i32 to vector<1x256xi32>
    %11 = arith.cmpi slt, %4, %10 : vector<1x256xi32>
    %cst_6 = arith.constant 1.000000e+00 : f32
    %cst_7 = arith.constant 0.000000e+00 : f32
    %12 = vector.broadcast %cst_6 : f32 to vector<1x256xf32>
    %13 = vector.broadcast %cst_7 : f32 to vector<1x256xf32>
    %14 = arith.select %11, %12, %13 : vector<1x256xi1>, vector<1x256xf32>
    %c16_i32 = arith.constant 16 : i32
    %15 = vector.broadcast %c16_i32 : i32 to vector<1x256xi32>
    %16 = arith.cmpi sge, %2, %15 : vector<1x256xi32>
    %cst_8 = arith.constant 1.000000e+00 : f32
    %cst_9 = arith.constant 0.000000e+00 : f32
    %17 = vector.broadcast %cst_8 : f32 to vector<1x256xf32>
    %18 = vector.broadcast %cst_9 : f32 to vector<1x256xf32>
    %19 = arith.select %16, %17, %18 : vector<1x256xi1>, vector<1x256xf32>
    %c240_i32 = arith.constant 240 : i32
    %20 = vector.broadcast %c240_i32 : i32 to vector<1x256xi32>
    %21 = arith.cmpi slt, %2, %20 : vector<1x256xi32>
    %cst_10 = arith.constant 1.000000e+00 : f32
    %cst_11 = arith.constant 0.000000e+00 : f32
    %22 = vector.broadcast %cst_10 : f32 to vector<1x256xf32>
    %23 = vector.broadcast %cst_11 : f32 to vector<1x256xf32>
    %24 = arith.select %21, %22, %23 : vector<1x256xi1>, vector<1x256xf32>
    %cst_12 = arith.constant 0.000000e+00 : f32
    %25 = vector.broadcast %cst_12 : f32 to vector<8x256xf32>
    %c17_i32 = arith.constant 17 : i32
    %26 = tpu.dynamic_rotate %0 by %c17_i32 dim 1 : vector<8x256xf32>, i32 -> vector<8x256xf32>
    %27 = arith.mulf %19, %9 : vector<1x256xf32>
    %28 = vector.broadcast %27 : vector<1x256xf32> to vector<8x256xf32>
    %29 = arith.mulf %26, %28 : vector<8x256xf32>
    %30 = vector.extract_strided_slice %1 {offsets = [0, 0, 0], sizes = [1, 8, 1], strides = [1, 1, 1]} : vector<1x8x9xf32> to vector<1x8x1xf32>
    %31 = vector.shape_cast %30 : vector<1x8x1xf32> to vector<8x1xf32>
    %32 = vector.broadcast %31 : vector<8x1xf32> to vector<8x256xf32>
    %33 = arith.mulf %32, %29 : vector<8x256xf32>
    %34 = arith.addf %25, %33 : vector<8x256xf32>
    %c16_i32_13 = arith.constant 16 : i32
    %35 = tpu.dynamic_rotate %0 by %c16_i32_13 dim 1 : vector<8x256xf32>, i32 -> vector<8x256xf32>
    %36 = vector.broadcast %19 : vector<1x256xf32> to vector<8x256xf32>
    %37 = arith.mulf %35, %36 : vector<8x256xf32>
    %38 = vector.extract_strided_slice %1 {offsets = [0, 0, 1], sizes = [1, 8, 1], strides = [1, 1, 1]} : vector<1x8x9xf32> to vector<1x8x1xf32>
    %39 = vector.shape_cast %38 : vector<1x8x1xf32> to vector<8x1xf32>
    %40 = vector.broadcast %39 : vector<8x1xf32> to vector<8x256xf32>
    %41 = arith.mulf %40, %37 : vector<8x256xf32>
    %42 = arith.addf %34, %41 : vector<8x256xf32>
    %c15_i32_14 = arith.constant 15 : i32
    %43 = tpu.dynamic_rotate %0 by %c15_i32_14 dim 1 : vector<8x256xf32>, i32 -> vector<8x256xf32>
    %44 = arith.mulf %19, %14 : vector<1x256xf32>
    %45 = vector.broadcast %44 : vector<1x256xf32> to vector<8x256xf32>
    %46 = arith.mulf %43, %45 : vector<8x256xf32>
    %47 = vector.extract_strided_slice %1 {offsets = [0, 0, 2], sizes = [1, 8, 1], strides = [1, 1, 1]} : vector<1x8x9xf32> to vector<1x8x1xf32>
    %48 = vector.shape_cast %47 : vector<1x8x1xf32> to vector<8x1xf32>
    %49 = vector.broadcast %48 : vector<8x1xf32> to vector<8x256xf32>
    %50 = arith.mulf %49, %46 : vector<8x256xf32>
    %51 = arith.addf %42, %50 : vector<8x256xf32>
    %c1_i32 = arith.constant 1 : i32
    %52 = tpu.dynamic_rotate %0 by %c1_i32 dim 1 : vector<8x256xf32>, i32 -> vector<8x256xf32>
    %53 = vector.broadcast %9 : vector<1x256xf32> to vector<8x256xf32>
    %54 = arith.mulf %52, %53 : vector<8x256xf32>
    %55 = vector.extract_strided_slice %1 {offsets = [0, 0, 3], sizes = [1, 8, 1], strides = [1, 1, 1]} : vector<1x8x9xf32> to vector<1x8x1xf32>
    %56 = vector.shape_cast %55 : vector<1x8x1xf32> to vector<8x1xf32>
    %57 = vector.broadcast %56 : vector<8x1xf32> to vector<8x256xf32>
    %58 = arith.mulf %57, %54 : vector<8x256xf32>
    %59 = arith.addf %51, %58 : vector<8x256xf32>
    %60 = vector.extract_strided_slice %1 {offsets = [0, 0, 4], sizes = [1, 8, 1], strides = [1, 1, 1]} : vector<1x8x9xf32> to vector<1x8x1xf32>
    %61 = vector.shape_cast %60 : vector<1x8x1xf32> to vector<8x1xf32>
    %62 = vector.broadcast %61 : vector<8x1xf32> to vector<8x256xf32>
    %63 = arith.mulf %62, %0 : vector<8x256xf32>
    %64 = arith.addf %59, %63 : vector<8x256xf32>
    %c255_i32 = arith.constant 255 : i32
    %65 = tpu.dynamic_rotate %0 by %c255_i32 dim 1 : vector<8x256xf32>, i32 -> vector<8x256xf32>
    %66 = vector.broadcast %14 : vector<1x256xf32> to vector<8x256xf32>
    %67 = arith.mulf %65, %66 : vector<8x256xf32>
    %68 = vector.extract_strided_slice %1 {offsets = [0, 0, 5], sizes = [1, 8, 1], strides = [1, 1, 1]} : vector<1x8x9xf32> to vector<1x8x1xf32>
    %69 = vector.shape_cast %68 : vector<1x8x1xf32> to vector<8x1xf32>
    %70 = vector.broadcast %69 : vector<8x1xf32> to vector<8x256xf32>
    %71 = arith.mulf %70, %67 : vector<8x256xf32>
    %72 = arith.addf %64, %71 : vector<8x256xf32>
    %c241_i32 = arith.constant 241 : i32
    %73 = tpu.dynamic_rotate %0 by %c241_i32 dim 1 : vector<8x256xf32>, i32 -> vector<8x256xf32>
    %74 = arith.mulf %24, %9 : vector<1x256xf32>
    %75 = vector.broadcast %74 : vector<1x256xf32> to vector<8x256xf32>
    %76 = arith.mulf %73, %75 : vector<8x256xf32>
    %77 = vector.extract_strided_slice %1 {offsets = [0, 0, 6], sizes = [1, 8, 1], strides = [1, 1, 1]} : vector<1x8x9xf32> to vector<1x8x1xf32>
    %78 = vector.shape_cast %77 : vector<1x8x1xf32> to vector<8x1xf32>
    %79 = vector.broadcast %78 : vector<8x1xf32> to vector<8x256xf32>
    %80 = arith.mulf %79, %76 : vector<8x256xf32>
    %81 = arith.addf %72, %80 : vector<8x256xf32>
    %c240_i32_15 = arith.constant 240 : i32
    %82 = tpu.dynamic_rotate %0 by %c240_i32_15 dim 1 : vector<8x256xf32>, i32 -> vector<8x256xf32>
    %83 = vector.broadcast %24 : vector<1x256xf32> to vector<8x256xf32>
    %84 = arith.mulf %82, %83 : vector<8x256xf32>
    %85 = vector.extract_strided_slice %1 {offsets = [0, 0, 7], sizes = [1, 8, 1], strides = [1, 1, 1]} : vector<1x8x9xf32> to vector<1x8x1xf32>
    %86 = vector.shape_cast %85 : vector<1x8x1xf32> to vector<8x1xf32>
    %87 = vector.broadcast %86 : vector<8x1xf32> to vector<8x256xf32>
    %88 = arith.mulf %87, %84 : vector<8x256xf32>
    %89 = arith.addf %81, %88 : vector<8x256xf32>
    %c239_i32 = arith.constant 239 : i32
    %90 = tpu.dynamic_rotate %0 by %c239_i32 dim 1 : vector<8x256xf32>, i32 -> vector<8x256xf32>
    %91 = arith.mulf %24, %14 : vector<1x256xf32>
    %92 = vector.broadcast %91 : vector<1x256xf32> to vector<8x256xf32>
    %93 = arith.mulf %90, %92 : vector<8x256xf32>
    %94 = vector.extract_strided_slice %1 {offsets = [0, 0, 8], sizes = [1, 8, 1], strides = [1, 1, 1]} : vector<1x8x9xf32> to vector<1x8x1xf32>
    %95 = vector.shape_cast %94 : vector<1x8x1xf32> to vector<8x1xf32>
    %96 = vector.broadcast %95 : vector<8x1xf32> to vector<8x256xf32>
    %97 = arith.mulf %96, %93 : vector<8x256xf32>
    %98 = arith.addf %89, %97 : vector<8x256xf32>
    %99 = vector.extract_strided_slice %98 {offsets = [0, 0], sizes = [4, 256], strides = [1, 1]} : vector<8x256xf32> to vector<4x256xf32>
    %cst_16 = arith.constant dense<0.000000e+00> : vector<256xf32>
    %100 = vector.multi_reduction <add>, %99, %cst_16 [0] : vector<4x256xf32> to vector<256xf32>
    %101 = vector.shape_cast %100 : vector<256xf32> to vector<1x256xf32>
    %102 = vector.extract_strided_slice %98 {offsets = [4, 0], sizes = [4, 256], strides = [1, 1]} : vector<8x256xf32> to vector<4x256xf32>
    %cst_17 = arith.constant dense<0.000000e+00> : vector<256xf32>
    %103 = vector.multi_reduction <add>, %102, %cst_17 [0] : vector<4x256xf32> to vector<256xf32>
    %104 = vector.shape_cast %103 : vector<256xf32> to vector<1x256xf32>
    %105 = tpu.concatenate %101, %104 in 0 : vector<1x256xf32>, vector<1x256xf32> -> vector<2x256xf32>
    %c0_18 = arith.constant 0 : index
    %106 = memref.load %arg2[%c0_18] : memref<1xf32, #tpu.memory_space<smem>>
    %107 = vector.broadcast %106 : f32 to vector<2x256xf32>
    %108 = arith.addf %105, %107 : vector<2x256xf32>
    %109 = arith.negf %108 : vector<2x256xf32>
    %110 = math.exp %109 : vector<2x256xf32>
    %cst_19 = arith.constant 1.000000e+00 : f32
    %111 = vector.broadcast %cst_19 : f32 to vector<2x256xf32>
    %112 = arith.addf %111, %110 : vector<2x256xf32>
    %113 = arith.divf %111, %112 : vector<2x256xf32>
    %cst_20 = arith.constant 2.000000e+00 : f32
    %114 = vector.broadcast %cst_20 : f32 to vector<2x256xf32>
    %115 = arith.mulf %113, %114 : vector<2x256xf32>
    %c0_21 = arith.constant 0 : index
    %c0_22 = arith.constant 0 : index
    %116 = vector.load %arg3[%c0_21, %c0_22] : memref<2x256xf32, #tpu.memory_space<vmem>>, vector<2x256xf32>
    tpu.vector_store %arg3[%c0_21, %c0_22], %115 {strides = array<i32>} : memref<2x256xf32, #tpu.memory_space<vmem>>, vector<2x256xf32>,
    return
  }
}

</mosaic_0001>

<bundles_post_ra>
// kernel: tpu_custom_call.1
= control target key start
LH: loop header
LB: loop body
LE: loop exit
PB: predicated region body
PF: predicated region fallthrough
CT: control target
= control target key end

     0   :  { %9 = vsyncpa [#allocation4], 0  ;;  %s557_s0 = inlined_call_operand.hbm [shape: f32[8,256], index: 0, kind: input, shape index: {}]   ;;  %s558_s1 = inlined_call_operand.hbm [shape: f32[1,8,9], index: 1, kind: input, shape index: {}]   ;;  %s559_s2 = inlined_call_operand.<no memory space> [shape: f32[1], index: 2, kind: input, shape index: {}]   ;;  %s560_s3 = inlined_call_operand.hbm [shape: f32[2,256], index: 3, kind: output, shape index: {}]  }
   0x1   :  { %10 = vsyncpa [#allocation7], 0 }
   0x2   :  { %11 = vsyncpa [#allocation5], 0  ;;  %s17_s14 = sshll.u32 %s557_s0, 4  ;;  %s447_s15 = smov [#allocation3]   ;;  %s18_s14 = int_to_ptr.hbm [resolvable:$true] %s17_s14 }
   0x3   :  { %s19_s16 = sshll.u32 %s447_s15, 4  ;;  %s28_s19 = sshll.u32 %s558_s1, 4  ;;  %s20_s16 = int_to_ptr.vmem [resolvable:$true] %s19_s16  ;;  %s29_s19 = int_to_ptr.hbm [resolvable:$true] %s28_s19 }
   0x4   :  { %22 = dma.hbm_to_vmem [thread:$0]  %s18_s14, 256, %s20_s16, [#allocation4]  }
   0x5   :  { %s448_s20 = smov [#allocation6]  }
   0x6   :  { %s30_s21 = sshll.u32 %s448_s20, 4  ;;  %s31_s21 = int_to_ptr.vmem [resolvable:$true] %s30_s21 }
   0x7   :  { %33 = dma.hbm_to_vmem [thread:$0]  %s29_s19, 128, %s31_s21, [#allocation7]  }
   0x8   :  { %441 = dma.done.wait [#allocation4], 256  }
   0x9   :  { %442 = vsyncadd [#allocation4], 4294967040 }
   0xa   :  { %443 = dma.done.wait [#allocation7], 128  }
   0xb   :  { %444 = vsyncadd [#allocation7], 4294967168  ;;  %v449_v0 = vmov 1   ;;  %v450_v1 = vmov 0   ;;  %v451_v2 = vmov 2   ;;  %v494_v3 = vld [vmem:[#allocation3] sm:$0xff]  ;;  %v47_v23 = vlaneseq }
   0xc   :  { %352 = vset.pattern.permute.xlu1 %v449_v0  ;;  %351 = vset.pattern.permute.xlu0 %v450_v1  ;;  %s452_s0 = smov 16   ;;  %s453_s1 = smov 17   ;;  %v499_v4 = vld [vmem:[#allocation3 + $0x8] sm:$0xff]  ;;  %v46_v5 = vld [vmem:[#allocation6] sm:$0xff]  ;;  %v456_v6 = vmov 3   ;;  %v457_v7 = vmov 4  }
   0xd   :  { %353 = vset.pattern.permute.xlu2 %v451_v2  ;;  %88 = vrot.lane.b32.xlu1 %v494_v3, %s452_s0  ;;  %s454_s22 = smov 15   ;;  %s455_s23 = smov 1   ;;  %v460_v8 = vmov 8   ;;  %v462_v9 = vmov 5   ;;  %v464_v10 = vmov 6   ;;  %v465_v11 = vmov 7  }
   0xe   :  { %68 = vrot.lane.b32.xlu0 %v494_v3, %s453_s1  ;;  %105 = vrot.lane.b32.xlu2 %v494_v3, %s454_s22  ;;  %s458_s24 = smov 127   ;;  %s459_s25 = smov 113   ;;  %v514_v25 = vand.u32 127, %v47_v23  ;;  %v466_v32 = vmov 0.0   ;;  %vm221_vm14 = vcmask 1043456   ;;  %vm256_vm15 = vcmask 1040384  }
   0xf   :  { %s461_s26 = smov 112   ;;  %s463_s27 = smov 111  }
  0x10   :  { %v49_v28 = vadd.s32 128, %v514_v25  ;;  %v50_v29 = vand.u32 15, %v514_v25  ;;  %vm60_vm1 = vcmp.ge.s32.totalorder %v514_v25, 16  ;;  %vm72_vm3 = vcmp.lt.s32.totalorder %v514_v25, 17  ;;  %s317_s6 = sshll.u32 %s560_s3, 4  ;;  %s318_s6 = int_to_ptr.hbm [resolvable:$true] %s317_s6 }
  0x11   :  { %v62_v36 = vsel %vm60_vm1, 1.0, %v466_v32  ;;  %vm92_vm5 = vcmp.lt.s32.totalorder %v514_v25, 16  ;;  %vm109_vm7 = vcmp.lt.s32.totalorder %v514_v25, 15  ;;  %vm128_vm8 = vcmp.lt.s32.totalorder %v514_v25, 1 }
  0x12   :  { %vm52_vm0 = vcmp.gt.s32.totalorder %v50_v29, 0  ;;  %v51_v31 = vand.u32 15, %v49_v28  ;;  %vm56_vm4 = vcmp.lt.s32.totalorder %v50_v29, 15  ;;  %vm65_vm9 = vcmp.lt.s32.totalorder %v49_v28, 240 }
  0x13   :  { %v519_v33 = vsel %vm52_vm0, 1.0, %v466_v32  ;;  %v524_v41 = vsel %vm56_vm4, 1.0, %v466_v32  ;;  %vm153_vm10 = vcmp.lt.s32.totalorder %v514_v25, 127  ;;  %v67_v2 = vsel %vm65_vm9, 1.0, %v466_v32 }
  0x14   :  { %vm53_vm2 = vcmp.gt.s32.totalorder %v51_v31, 0  ;;  %v75_v37 = vmul.f32 %v62_v36, %v519_v33  ;;  %vm57_vm6 = vcmp.lt.s32.totalorder %v51_v31, 15  ;;  %v112_v46 = vmul.f32 %v62_v36, %v524_v41 }
  0x15   :  { %90 = vrot.lane.b32.xlu1 %v499_v4, %s452_s0  ;;  %v55_v38 = vsel %vm53_vm2, 1.0, %v466_v32  ;;  %v59_v47 = vsel %vm57_vm6, 1.0, %v466_v32  ;;  %vm170_vm11 = vcmp.lt.s32.totalorder %v514_v25, 113  ;;  %vm189_vm12 = vcmp.lt.s32.totalorder %v514_v25, 112 }
  0x16   :  { %70 = vrot.lane.b32.xlu0 %v499_v4, %s453_s1  ;;  %107 = vrot.lane.b32.xlu2 %v499_v4, %s454_s22  ;;  %vm206_vm13 = vcmp.lt.s32.totalorder %v514_v25, 111 }
  0x1d   :  { %98 = vperm.xlu1 %352, %v46_v5  }
  0x1e   :  { %81 = vperm.xlu0 %351, %v46_v5   ;;  %124 = vrot.lane.b32.xlu2 %v494_v3, %s455_s23 }
  0x25   :  { %126 = vrot.lane.b32.xlu1 %v499_v4, %s455_s23 }
  0x26   :  { %354 = vset.pattern.permute.xlu0 %v456_v6  ;;  %117 = vperm.xlu2 %353, %v46_v5  }
  0x27   :  { %134 = vperm.xlu0 %354, %v46_v5   ;;  %355 = vset.pattern.permute.xlu1 %v457_v7 }
  0x2d   :  { %149 = vrot.lane.b32.xlu1 %v494_v3, %s458_s24 }
  0x2e   :  { %151 = vrot.lane.b32.xlu2 %v499_v4, %s458_s24 }
  0x2f   :  { %168 = vrot.lane.b32.xlu0 %v499_v4, %s459_s25  ;;  %359 = vset.pattern.permute.xlu2 %v460_v8 }
  0x30   :  { %360 = vset.pattern.permute.xlu0 %v460_v8 }
  0x35   :  { %142 = vperm.xlu1 %355, %v46_v5  }
  0x36   :  { %166 = vrot.lane.b32.xlu2 %v494_v3, %s459_s25 }
  0x37   :  { %187 = vrot.lane.b32.xlu0 %v499_v4, %s461_s26 }
  0x3d   :  { %356 = vset.pattern.permute.xlu1 %v462_v9 }
  0x3e   :  { %159 = vperm.xlu1 %356, %v46_v5   ;;  %185 = vrot.lane.b32.xlu2 %v494_v3, %s461_s26 }
  0x3f   :  { %204 = vrot.lane.b32.xlu0 %v499_v4, %s463_s27 }
  0x46   :  { %357 = vset.pattern.permute.xlu1 %v464_v10  ;;  %202 = vrot.lane.b32.xlu2 %v494_v3, %s463_s27 }
  0x47   :  { %178 = vperm.xlu1 %357, %v46_v5  }
  0x4e   :  { %214 = vperm.xlu2 %359, %v46_v5  }
  0x4f   :  { %358 = vset.pattern.permute.xlu1 %v465_v11 }
  0x50   :  { %195 = vperm.xlu1 %358, %v46_v5  }
  0x68   :  { %v106_v12 = vpop.permute.xlu2 %105 }
  0x70   :  { %v108_v13 = vpop.permute.xlu2 %107 }
  0x71   :  { %v110_v48 = vsel %vm109_vm7, %v106_v12, %v108_v13  ;;  %v111_v49 = vsel %vm109_vm7, %v108_v13, %v106_v12  ;;  %v174_v12 = vmul.f32 %v67_v2, %v55_v38 }
  0x72   :  { %v114_v60 = vmul.f32 %v112_v46, %v111_v49  ;;  %v115_v61 = vmul.f32 %v110_v48, %v59_v47 }
  0x78   :  { %v125_v17 = vpop.permute.xlu2 %124 }
  0x7f   :  { %v89_v14 = vpop.permute.xlu1 %88 }
  0x80   :  { %v69_v15 = vpop.permute.xlu0 %68  ;;  %v118_v20 = vpop.permute.xlu2 %117 }
  0x81   :  { %v120_v5 = vmul.f32 %v118_v20, %v114_v60  ;;  %v121_v6 = vmul.f32 %v118_v20, %v115_v61 }
  0x87   :  { %v91_v16 = vpop.permute.xlu1 %90 }
  0x88   :  { %v71_v18 = vpop.permute.xlu0 %70  ;;  %v152_v24 = vpop.permute.xlu2 %151  ;;  %v94_v42 = vsel %vm92_vm5, %v91_v16, %v89_v14  ;;  %v93_v52 = vsel %vm92_vm5, %v89_v14, %v91_v16 }
  0x89   :  { %v73_v39 = vsel %vm72_vm3, %v69_v15, %v71_v18  ;;  %v74_v40 = vsel %vm72_vm3, %v71_v18, %v69_v15  ;;  %v95_v50 = vmul.f32 %v94_v42, %v62_v36 }
  0x8a   :  { %v77_v43 = vmul.f32 %v75_v37, %v74_v40  ;;  %v78_v44 = vmul.f32 %v73_v39, %v55_v38 }
  0x8f   :  { %v99_v19 = vpop.permute.xlu1 %98 }
  0x90   :  { %v82_v21 = vpop.permute.xlu0 %81  ;;  %v167_v30 = vpop.permute.xlu2 %166  ;;  %v101_v56 = vmul.f32 %v99_v19, %v95_v50  ;;  %v102_v57 = vmul.f32 %v99_v19, %v93_v52 }
  0x91   :  { %v84_v58 = vmul.f32 %v82_v21, %v77_v43  ;;  %v85_v59 = vmul.f32 %v82_v21, %v78_v44 }
  0x93   :  { %v103_v0 = vadd.f32 %v101_v56, %v84_v58  ;;  %v104_v1 = vadd.f32 %v102_v57, %v85_v59 }
  0x95   :  { %v122_v15 = vadd.f32 %v120_v5, %v103_v0  ;;  %v123_v16 = vadd.f32 %v121_v6, %v104_v1 }
  0x97   :  { %v127_v22 = vpop.permute.xlu1 %126 }
  0x98   :  { %v530_v45 = vpop.permute.xlu2 %185  ;;  %v129_v53 = vsel %vm128_vm8, %v125_v17, %v127_v22  ;;  %v130_v54 = vsel %vm128_vm8, %v127_v22, %v125_v17  ;;  %vm306_vm8 = vcmask 1041408  }
  0x99   :  { %v135_v26 = vpop.permute.xlu0 %134  ;;  %v131_v62 = vmul.f32 %v130_v54, %v519_v33  ;;  %v132_v63 = vmul.f32 %v129_v53, %v55_v38 }
  0x9b   :  { %v137_v7 = vmul.f32 %v135_v26, %v131_v62  ;;  %v138_v8 = vmul.f32 %v135_v26, %v132_v63 }
  0x9d   :  { %v139_v23 = vadd.f32 %v137_v7, %v122_v15 }
  0x9f   :  { %v150_v27 = vpop.permute.xlu1 %149 }
  0xa0   :  { %v154_v9 = vsel %vm153_vm10, %v150_v27, %v152_v24  ;;  %v155_v10 = vsel %vm153_vm10, %v152_v24, %v150_v27  ;;  %v203_v11 = vpop.permute.xlu2 %202  ;;  %v140_v24 = vadd.f32 %v138_v8, %v123_v16  ;;  %v210_v27 = vmul.f32 %v67_v2, %v59_v47 }
  0xa1   :  { %v169_v35 = vpop.permute.xlu0 %168  ;;  %v156_v18 = vmul.f32 %v154_v9, %v524_v41  ;;  %v157_v19 = vmul.f32 %v155_v10, %v59_v47 }
  0xa2   :  { %v171_v13 = vsel %vm170_vm11, %v167_v30, %v169_v35  ;;  %v172_v17 = vsel %vm170_vm11, %v169_v35, %v167_v30 }
  0xa3   :  { %v175_v26 = vmul.f32 %v171_v13, %v519_v33  ;;  %v176_v28 = vmul.f32 %v174_v12, %v172_v17  ;;  %v260_v17 = vstv %s559_s2  ;;  %s467_s2 = smov [#allocation8]  }
  0xa4   :  { %s315_s30 = sshll.u32 %s467_s2, 4  ;;  %s316_s30 = int_to_ptr.vmem [resolvable:$true] %s315_s30 }
  0xa7   :  { %v143_v34 = vpop.permute.xlu1 %142 }
  0xa8   :  { %v145_v20 = vmul.f32 %v143_v34, %v494_v3  ;;  %v146_v21 = vmul.f32 %v143_v34, %v499_v4  ;;  %v215_v42 = vpop.permute.xlu2 %214 }
  0xa9   :  { %v188_v55 = vpop.permute.xlu0 %187 }
  0xaa   :  { %v191_v30 = vsel %vm189_vm12, %v188_v55, %v530_v45  ;;  %v147_v36 = vadd.f32 %v145_v20, %v139_v23  ;;  %v148_v37 = vadd.f32 %v146_v21, %v140_v24  ;;  %v190_v44 = vsel %vm189_vm12, %v530_v45, %v188_v55 }
  0xab   :  { %v193_v4 = vmul.f32 %v191_v30, %v67_v2 }
  0xb0   :  { %v160_v51 = vpop.permute.xlu1 %159 }
  0xb1   :  { %v205_v22 = vpop.permute.xlu0 %204  ;;  %v162_v29 = vmul.f32 %v160_v51, %v156_v18  ;;  %v163_v31 = vmul.f32 %v160_v51, %v157_v19 }
  0xb2   :  { %v207_v32 = vsel %vm206_vm13, %v203_v11, %v205_v22  ;;  %v208_v35 = vsel %vm206_vm13, %v205_v22, %v203_v11 }
  0xb3   :  { %v164_v34 = vadd.f32 %v162_v29, %v147_v36  ;;  %v165_v39 = vadd.f32 %v163_v31, %v148_v37  ;;  %v211_v40 = vmul.f32 %v207_v32, %v524_v41  ;;  %v212_v33 = vmul.f32 %v210_v27, %v208_v35 }
  0xb5   :  { %v217_v50 = vmul.f32 %v215_v42, %v211_v40  ;;  %v218_v51 = vmul.f32 %v215_v42, %v212_v33 }
  0xb9   :  { %v179_v14 = vpop.permute.xlu1 %178 }
  0xba   :  { %v181_v3 = vmul.f32 %v179_v14, %v175_v26  ;;  %v182_v38 = vmul.f32 %v179_v14, %v176_v28 }
  0xbc   :  { %v183_v46 = vadd.f32 %v181_v3, %v164_v34  ;;  %v184_v47 = vadd.f32 %v182_v38, %v165_v39 }
  0xc2   :  { %v196_v43 = vpop.permute.xlu1 %195 }
  0xc3   :  { %v198_v48 = vmul.f32 %v196_v43, %v190_v44  ;;  %v199_v49 = vmul.f32 %v196_v43, %v193_v4 }
  0xc5   :  { %v200_v52 = vadd.f32 %v198_v48, %v183_v46  ;;  %v201_v53 = vadd.f32 %v199_v49, %v184_v47 }
  0xc7   :  { %v219_v54 = vadd.f32 %v217_v50, %v200_v52  ;;  %v220_v56 = vadd.f32 %v218_v51, %v201_v53 }
  0xc9   :  { %v222_v57 = vsel %vm221_vm14, %v219_v54, 0.0  ;;  %v229_v41 = vsel %vm221_vm14, %v220_v56, 0.0  ;;  %v238_v58 = vrot.slane %v219_v54, 4  ;;  %v239_v59 = vrot.slane %v220_v56, 4 }
  0xca   :  { %v223_v60 = vrot.slane %v222_v57, 4  ;;  %v230_v61 = vrot.slane %v229_v41, 4 }
  0xcb   :  { %v242_v62 = vsel %vm221_vm14, %v238_v58, 0.0  ;;  %v249_v25 = vsel %vm221_vm14, %v239_v59, 0.0 }
  0xcc   :  { %v224_v45 = vadd.f32 %v223_v60, %v222_v57  ;;  %v231_v55 = vadd.f32 %v230_v61, %v229_v41  ;;  %v243_v63 = vrot.slane %v242_v62, 4  ;;  %v250_v0 = vrot.slane %v249_v25, 4 }
  0xce   :  { %v225_v1 = vrot.slane %v224_v45, 2  ;;  %v232_v2 = vrot.slane %v231_v55, 2  ;;  %v244_v5 = vadd.f32 %v243_v63, %v242_v62  ;;  %v251_v6 = vadd.f32 %v250_v0, %v249_v25 }
  0xd0   :  { %v226_v7 = vadd.f32 %v225_v1, %v224_v45  ;;  %v233_v8 = vadd.f32 %v232_v2, %v231_v55  ;;  %v245_v9 = vrot.slane %v244_v5, 2  ;;  %v252_v10 = vrot.slane %v251_v6, 2 }
  0xd2   :  { %v227_v11 = vrot.slane %v226_v7, 1  ;;  %v234_v12 = vrot.slane %v233_v8, 1  ;;  %v246_v13 = vadd.f32 %v245_v9, %v244_v5  ;;  %v253_v14 = vadd.f32 %v252_v10, %v251_v6 }
  0xd4   :  { %v247_v15 = vrot.slane %v246_v13, 1  ;;  %v254_v16 = vrot.slane %v253_v14, 1  ;;  %v228_v18 = vadd.f32 %v227_v11, %v226_v7  ;;  %v235_v19 = vadd.f32 %v234_v12, %v233_v8 }
  0xd6   :  { %v248_v20 = vadd.f32 %v247_v15, %v246_v13  ;;  %v255_v21 = vadd.f32 %v254_v16, %v253_v14 }
  0xd8   :  { %v257_v22 = vsel %vm256_vm15, %v228_v18, %v248_v20  ;;  %v258_v23 = vsel %vm256_vm15, %v235_v19, %v255_v21 }
  0xd9   :  { %v261_v24 = vadd.f32 %v260_v17, %v257_v22  ;;  %v262_v26 = vadd.f32 %v260_v17, %v258_v23 }
  0xdb   :  { %v328_v27 = vmul.f32 -1.442695, %v261_v24  ;;  %v329_v28 = vmul.f32 -1.442695, %v262_v26 }
  0xdd   :  { %361 = vpow2.f32 %v328_v27 }
  0xde   :  { %363 = vpow2.f32 %v329_v28 }
  0xe3   :  { %v362_v29 = vpop.eup %361 }
  0xe4   :  { %v364_v31 = vpop.eup %363  ;;  %v269_v30 = vadd.f32 1.0, %v362_v29 }
  0xe5   :  { %v270_v32 = vadd.f32 1.0, %v364_v31 }
  0xe6   :  { %365 = vrcp.f32 %v269_v30  ;;  %v282_v39 = vand.u32 2147483648, %v269_v30  ;;  %v280_v33 = vand.u32 2147483647, %v269_v30  ;;  %vm276_vm2 = vweird.f32 %v269_v30 }
  0xe7   :  { %367 = vrcp.f32 %v270_v32  ;;  %v297_v40 = vand.u32 2147483648, %v270_v32  ;;  %v295_v43 = vand.u32 2147483647, %v270_v32  ;;  %vm291_vm4 = vweird.f32 %v270_v32 }
  0xe8   :  { %v283_v48 = vor.u32 1.1754944e-38, %v282_v39  ;;  %vm281_vm6 = vcmp.eq.f32.partialorder %v280_v33, 8.507059e+37 }
  0xe9   :  { %v298_v49 = vor.u32 1.1754944e-38, %v297_v40  ;;  %vm296_vm7 = vcmp.eq.f32.partialorder %v295_v43, 8.507059e+37 }
  0xec   :  { %v366_v35 = vpop.eup %365 }
  0xed   :  { %v368_v36 = vpop.eup %367  ;;  %v272_v37 = vmul.f32 %v366_v35, %v269_v30  ;;  %vm277_vm0 = vweird.f32 %v366_v35 }
  0xee   :  { %v287_v3 = vmul.f32 %v368_v36, %v270_v32  ;;  %vm292_vm1 = vweird.f32 %v368_v36  ;;  %vm278_vm3 = vmor %vm276_vm2, %vm277_vm0 }
  0xef   :  { %v273_v38 = vsub.f32 1.0, %v272_v37  ;;  %vm293_vm5 = vmor %vm291_vm4, %vm292_vm1 }
  0xf0   :  { %v288_v4 = vsub.f32 1.0, %v287_v3 }
  0xf1   :  { %v274_v34 = vmul.f32 %v366_v35, %v273_v38 }
  0xf2   :  { %v289_v42 = vmul.f32 %v368_v36, %v288_v4 }
  0xf3   :  { %v275_v44 = vadd.f32 %v366_v35, %v274_v34 }
  0xf4   :  { %v290_v46 = vadd.f32 %v368_v36, %v289_v42 }
  0xf5   :  { %v279_v47 = vsel %vm278_vm3, %v366_v35, %v275_v44 }
  0xf6   :  { %v294_v50 = vsel %vm293_vm5, %v368_v36, %v290_v46  ;;  %v284_v51 = vsel %vm281_vm6, %v283_v48, %v279_v47 }
  0xf7   :  { %v299_v52 = vsel %vm296_vm7, %v298_v49, %v294_v50  ;;  %v301_v54 = vmul.f32 2.0, %v284_v51 }
  0xf8   :  { %v302_v53 = vmul.f32 2.0, %v299_v52 }
  0xfa   :  { %v305_v56 = vrot.slane %v302_v53, 6 }
  0xfc   :  { %v307_v57 = vsel %vm306_vm8, %v301_v54, %v305_v56 }
  0xfd   :  { %309 = vst [vmem:[#allocation8] sm:$0xf] %v307_v57 }
  0xfe   :  { %320 = dma.vmem_to_hbm [thread:$0]  %s316_s30, 64, %s318_s6, [#allocation5]  }
  0xff   :  { %445 = dma.done.wait [#allocation5], 64  }
 0x100   :  { %446 = vsyncadd [#allocation5], 4294967232 }
 0x101   :  { %325 = vsyncpa [#allocation4], 1 }
 0x102   :  { %326 = vsyncpa [#allocation7], 1 }
 0x103   :  { %327 = vsyncpa [#allocation5], 1 }

</bundles_post_ra>
